<compile_context>
chip_gen: v7x
topology: tpu7x:2x2x1
jax: 0.10.0
libtpu: 0.0.40
codegen_flags: <defaults>
</compile_context>

<pallas_src>
import jax
import jax.numpy as jnp
from jax.experimental import pallas as pl
from jax.experimental.pallas import tpu as pltpu


def _round_up(n: int, m: int) -> int:
    return ((n + m - 1) // m) * m


def feedforward_kernel(x_ref, w1_ref, b1_ref, w2_ref, b2_ref, o_ref):
    # In-kernel cast of the activations to the weight compute dtype (free VPU
    # work under the MXU; avoids a wrapper-side HBM pass on the bf16 path).
    x = x_ref[...].astype(w1_ref.dtype)                     # [TB, in_f]

    # fc1: canonical [M,K] @ [K,N] -> [TB, HP]; f32 accumulation on the MXU.
    h = jnp.dot(x, w1_ref[...], preferred_element_type=jnp.float32)
    h = jnp.maximum(h + b1_ref[...], 0.0)                   # bias + ReLU (f32, VPU)
    h = h.astype(w2_ref.dtype)                              # back to compute dtype

    # fc2: [TB, HP] @ [HP, CP] -> [TB, CP]; f32 accumulation.
    z = jnp.dot(h, w2_ref[...], preferred_element_type=jnp.float32)
    z = z + b2_ref[...]
    o_ref[...] = jax.nn.sigmoid(z).astype(o_ref.dtype)      # sigmoid on EUP


def prepare_params(w1, b1, w2, b2, compute_dtype=jnp.bfloat16):
    """One-time parameter prep (do NOT call per forward).

    Takes PyTorch-layout params (w1: [hidden, in], b1: [hidden],
    w2: [classes, hidden], b2: [classes]) and returns lane-dense, padded,
    PRE-TRANSPOSED parameters in canonical [K, N] layout:
      w1 -> [in, hidden_pad], w2 -> [hidden_pad, classes_pad],
    with hidden/classes rounded up to multiples of 128. Padding with zero
    rows/cols and zero bias is a mathematical no-op. Weights are cast to
    `compute_dtype` (bf16 by default = MXU fast path); biases stay f32."""
    hidden, in_f = w1.shape
    num_classes = w2.shape[0]
    hp = _round_up(hidden, 128)
    cp = _round_up(num_classes, 128)

    w1p = jnp.zeros((in_f, hp), compute_dtype).at[:, :hidden].set(
        w1.T.astype(compute_dtype))
    b1p = jnp.zeros((1, hp), jnp.float32).at[0, :hidden].set(
        b1.astype(jnp.float32))
    w2p = jnp.zeros((hp, cp), compute_dtype).at[:hidden, :num_classes].set(
        w2.T.astype(compute_dtype))
    b2p = jnp.zeros((1, cp), jnp.float32).at[0, :num_classes].set(
        b2.astype(jnp.float32))
    return dict(w1=w1p, b1=b1p, w2=w2p, b2=b2p, num_classes=num_classes)


def _resident_spec(shape, index_map):
    """BlockSpec for an operand whose block never changes across the grid:
    single-buffer it (halves its VMEM) when the running JAX supports it."""
    try:
        return pl.BlockSpec(shape, index_map, pipeline_mode=pl.Buffered(1))
    except (TypeError, AttributeError):   # older JAX: fall back to default
        return pl.BlockSpec(shape, index_map)


def feedforward(x, params, *, tb=512, out_dtype=jnp.float32,
                vmem_limit_bytes=32 * 1024 * 1024):
    """x: [B, in_features] (any float dtype); params from prepare_params().
    Returns sigmoid(relu(x @ W1^T + b1) @ W2^T + b2) as `out_dtype`
    [B, num_classes]."""
    B, in_f = x.shape
    w1, b1, w2, b2 = params["w1"], params["b1"], params["w2"], params["b2"]
    num_classes = params["num_classes"]
    assert w1.shape[0] == in_f
    hp = w1.shape[1]
    cp = w2.shape[1]

    # --- batch-tile selection -------------------------------------------
    # Resident (single-buffered) weights + biases.
    w_bytes = w1.dtype.itemsize
    resident = (in_f * hp + hp * cp) * w_bytes + (hp + cp) * 4
    x_bytes = x.dtype.itemsize
    o_bytes = jnp.dtype(out_dtype).itemsize

    TB = _round_up(min(tb, _round_up(B, 8)), 8)
    if TB >= B and B >= 16:
        # >= 2 batch tiles so ("parallel",) can shard across v7x's 2 TCs.
        TB = _round_up(-(-B // 2), 8)
    # Fit double-buffered activation/output tiles + resident weights in budget.
    budget = int(0.75 * vmem_limit_bytes)
    while TB > 8 and resident + 2 * TB * (in_f * x_bytes + cp * o_bytes) > budget:
        TB = max(8, _round_up(TB // 2, 8))

    grid = (pl.cdiv(B, TB),)   # ragged last block handled by Pallas masking

    out_padded = pl.pallas_call(
        feedforward_kernel,
        out_shape=jax.ShapeDtypeStruct((B, cp), out_dtype),
        grid=grid,
        in_specs=[
            pl.BlockSpec((TB, in_f), lambda i: (i, 0)),        # x: batch-tiled
            _resident_spec((in_f, hp), lambda i: (0, 0)),      # w1: resident
            _resident_spec((1, hp), lambda i: (0, 0)),         # b1: resident
            _resident_spec((hp, cp), lambda i: (0, 0)),        # w2: resident
            _resident_spec((1, cp), lambda i: (0, 0)),         # b2: resident
        ],
        out_specs=pl.BlockSpec((TB, cp), lambda i: (i, 0)),    # lane-dense store
        compiler_params=pltpu.CompilerParams(
            dimension_semantics=("parallel",),                 # 2 TCs on v7x
            vmem_limit_bytes=vmem_limit_bytes,                 # v7x-safe budget
        ),
    )(x, w1, b1, w2, b2)

    # Padded classes sliced off; under jit this fuses into the consumer.
    return out_padded[:, :num_classes]


def reference(x, w1, b1, w2, b2):
    h = jnp.maximum(x @ w1.T + b1, 0.0)
    return jax.nn.sigmoid(h @ w2.T + b2)


if __name__ == "__main__":
    # Shapes consistent with the module's constructor:
    # FeedFowrad(in_features=32, hidden_sizes=64, num_classes=16), batch=8.
    B, in_features, hidden_sizes, num_classes = 8, 32, 64, 16

    key = jax.random.PRNGKey(0)
    kx, kw1, kb1, kw2, kb2 = jax.random.split(key, 5)

    x = jax.random.normal(kx, (B, in_features), dtype=jnp.float32)
    # Deterministic init mimicking nn.Linear's uniform(-1/sqrt(fan_in), ...).
    lim1 = 1.0 / (in_features ** 0.5)
    lim2 = 1.0 / (hidden_sizes ** 0.5)
    w1 = jax.random.uniform(kw1, (hidden_sizes, in_features), jnp.float32, -lim1, lim1)
    b1 = jax.random.uniform(kb1, (hidden_sizes,), jnp.float32, -lim1, lim1)
    w2 = jax.random.uniform(kw2, (num_classes, hidden_sizes), jnp.float32, -lim2, lim2)
    b2 = jax.random.uniform(kb2, (num_classes,), jnp.float32, -lim2, lim2)

    ref = reference(x, w1, b1, w2, b2)

    # Exact f32 path.
    params_f32 = prepare_params(w1, b1, w2, b2, compute_dtype=jnp.float32)
    out_f32 = jax.block_until_ready(feedforward(x, params_f32))
    assert out_f32.shape == (B, num_classes), out_f32.shape
    assert jnp.allclose(out_f32, ref, atol=1e-5, rtol=1e-5), "f32 mismatch vs reference"

    # Default bf16 MXU fast path (f32 accumulation + f32 epilogue).
    params_bf16 = prepare_params(w1, b1, w2, b2)
    out_bf16 = jax.block_until_ready(feedforward(x, params_bf16))
    assert out_bf16.shape == (B, num_classes), out_bf16.shape
    assert jnp.allclose(out_bf16, ref, atol=3e-2, rtol=3e-2), "bf16 mismatch vs reference"

    print("KERNEL_OK")
</pallas_src>

<mosaic_0001>
module attributes {stable_mosaic.version = 11 : i64} {
  func.func @feedforward_kernel(%arg0: i32, %arg1: memref<8x32xf32, #tpu.memory_space<vmem>>, %arg2: memref<32x128xf32, #tpu.memory_space<vmem>>, %arg3: memref<1x128xf32, #tpu.memory_space<vmem>>, %arg4: memref<128x128xf32, #tpu.memory_space<vmem>>, %arg5: memref<1x128xf32, #tpu.memory_space<vmem>>, %arg6: memref<8x128xf32, #tpu.memory_space<vmem>>) attributes {dimension_semantics = [#tpu.dimension_semantics<parallel>], iteration_bounds = array<i64: 1>, scalar_prefetch = 0 : i64, scratch_operands = 0 : i64, tpu.core_type = #tpu.core_type<tc>, window_params = [{transform_indices = @transform_0, window_bounds = array<i64: 8, 32>}, {pipeline_mode = #tpu.pipeline_mode<synchronous>, transform_indices = @transform_1, window_bounds = array<i64: 32, 128>}, {pipeline_mode = #tpu.pipeline_mode<synchronous>, transform_indices = @transform_2, window_bounds = array<i64: 1, 128>}, {pipeline_mode = #tpu.pipeline_mode<synchronous>, transform_indices = @transform_3, window_bounds = array<i64: 128, 128>}, {pipeline_mode = #tpu.pipeline_mode<synchronous>, transform_indices = @transform_4, window_bounds = array<i64: 1, 128>}, {transform_indices = @transform_5, window_bounds = array<i64: 8, 128>}]} {
    %c0 = arith.constant 0 : index
    %c0_0 = arith.constant 0 : index
    %0 = vector.load %arg1[%c0, %c0_0] : memref<8x32xf32, #tpu.memory_space<vmem>>, vector<8x32xf32>
    %c0_1 = arith.constant 0 : index
    %c0_2 = arith.constant 0 : index
    %1 = vector.load %arg2[%c0_1, %c0_2] : memref<32x128xf32, #tpu.memory_space<vmem>>, vector<32x128xf32>
    %cst = arith.constant dense<0.000000e+00> : vector<8x128xf32>
    %2 = tpu.matmul %0, %1, %cst {dimension_numbers = #tpu.dot_dimension_numbers<[1], [0], [0], [1], [0, 0, 1, 1], [], []>} : vector<8x32xf32>, vector<32x128xf32>, vector<8x128xf32> -> vector<8x128xf32>
    %c0_3 = arith.constant 0 : index
    %c0_4 = arith.constant 0 : index
    %3 = vector.load %arg3[%c0_3, %c0_4] : memref<1x128xf32, #tpu.memory_space<vmem>>, vector<1x128xf32>
    %4 = vector.broadcast %3 : vector<1x128xf32> to vector<8x128xf32>
    %5 = arith.addf %2, %4 : vector<8x128xf32>
    %cst_5 = arith.constant 0.000000e+00 : f32
    %6 = vector.broadcast %cst_5 : f32 to vector<8x128xf32>
    %7 = arith.maximumf %5, %6 : vector<8x128xf32>
    %c0_6 = arith.constant 0 : index
    %c0_7 = arith.constant 0 : index
    %8 = vector.load %arg4[%c0_6, %c0_7] : memref<128x128xf32, #tpu.memory_space<vmem>>, vector<128x128xf32>
    %cst_8 = arith.constant dense<0.000000e+00> : vector<8x128xf32>
    %9 = tpu.matmul %7, %8, %cst_8 {dimension_numbers = #tpu.dot_dimension_numbers<[1], [0], [0], [1], [0, 0, 1, 1], [], []>} : vector<8x128xf32>, vector<128x128xf32>, vector<8x128xf32> -> vector<8x128xf32>
    %c0_9 = arith.constant 0 : index
    %c0_10 = arith.constant 0 : index
    %10 = vector.load %arg5[%c0_9, %c0_10] : memref<1x128xf32, #tpu.memory_space<vmem>>, vector<1x128xf32>
    %11 = vector.broadcast %10 : vector<1x128xf32> to vector<8x128xf32>
    %12 = arith.addf %9, %11 : vector<8x128xf32>
    %13 = arith.negf %12 : vector<8x128xf32>
    %14 = math.exp %13 : vector<8x128xf32>
    %cst_11 = arith.constant 1.000000e+00 : f32
    %15 = vector.broadcast %cst_11 : f32 to vector<8x128xf32>
    %16 = arith.addf %15, %14 : vector<8x128xf32>
    %17 = arith.divf %15, %16 : vector<8x128xf32>
    %c0_12 = arith.constant 0 : index
    %c0_13 = arith.constant 0 : index
    %18 = vector.load %arg6[%c0_12, %c0_13] : memref<8x128xf32, #tpu.memory_space<vmem>>, vector<8x128xf32>
    tpu.vector_store %arg6[%c0_12, %c0_13], %17 {strides = array<i32>} : memref<8x128xf32, #tpu.memory_space<vmem>>, vector<8x128xf32>,
    return
  }
  func.func @transform_0(%arg0: i32) -> (i32, i32) {
    %c0_i32 = arith.constant 0 : i32
    %c0_i32_0 = arith.constant 0 : i32
    return %arg0, %c0_i32 : i32, i32
  }
  func.func @transform_1(%arg0: i32) -> (i32, i32) {
    %c0_i32 = arith.constant 0 : i32
    %c0_i32_0 = arith.constant 0 : i32
    %c0_i32_1 = arith.constant 0 : i32
    return %c0_i32, %c0_i32_0 : i32, i32
  }
  func.func @transform_2(%arg0: i32) -> (i32, i32) {
    %c0_i32 = arith.constant 0 : i32
    %c0_i32_0 = arith.constant 0 : i32
    %c0_i32_1 = arith.constant 0 : i32
    return %c0_i32, %c0_i32_0 : i32, i32
  }
  func.func @transform_3(%arg0: i32) -> (i32, i32) {
    %c0_i32 = arith.constant 0 : i32
    %c0_i32_0 = arith.constant 0 : i32
    %c0_i32_1 = arith.constant 0 : i32
    return %c0_i32, %c0_i32_0 : i32, i32
  }
  func.func @transform_4(%arg0: i32) -> (i32, i32) {
    %c0_i32 = arith.constant 0 : i32
    %c0_i32_0 = arith.constant 0 : i32
    %c0_i32_1 = arith.constant 0 : i32
    return %c0_i32, %c0_i32_0 : i32, i32
  }
  func.func @transform_5(%arg0: i32) -> (i32, i32) {
    %c0_i32 = arith.constant 0 : i32
    %c0_i32_0 = arith.constant 0 : i32
    return %arg0, %c0_i32 : i32, i32
  }
}

</mosaic_0001>

<bundles_post_ra>
// kernel: tpu_custom_call.1
= control target key start
LH: loop header
LB: loop body
LE: loop exit
PB: predicated region body
PF: predicated region fallthrough
CT: control target
= control target key end

     0   :  { %10 = vsyncpa [#allocation3], 0  ;;  %s571_s0 = inlined_call_operand.hbm [shape: f32[8,32], index: 0, kind: input, shape index: {}]   ;;  %s572_s1 = inlined_call_operand.hbm [shape: f32[32,128], index: 1, kind: input, shape index: {}]   ;;  %s573_s2 = inlined_call_operand.vmem [shape: f32[1,128], index: 2, kind: input, shape index: {}]   ;;  %s574_s3 = inlined_call_operand.hbm [shape: f32[128,128], index: 3, kind: input, shape index: {}]   ;;  %s575_s4 = inlined_call_operand.vmem [shape: f32[1,128], index: 4, kind: input, shape index: {}]   ;;  %s576_s5 = inlined_call_operand.hbm [shape: f32[8,128], index: 5, kind: output, shape index: {}]  }
   0x1   :  { %11 = vsyncpa [#allocation6], 0 }
   0x2   :  { %12 = vsyncpa [#allocation4], 0  ;;  %s472_s18 = smov [#allocation5]   ;;  %s378_s22 = scalar_lea.hbm %s572_s1, 512 }
   0x3   :  { %s28_s19 = sshll.u32 %s472_s18, 4  ;;  %p379_p0 = scmp.ne.s32.totalorder %s572_s1, %s378_s22  ;;  %s29_s19 = int_to_ptr.vmem [resolvable:$true] %s28_s19 }
   0x4   :  { %p382_p1 = scmp.lt.u32.totalorder %s378_s22, %s572_s1 }
   0x6   :  { %p384_p2 = pnand %p382_p1, %p379_p0 }
   0x8   :  { %387 = shalt.err (!%p384_p2)
}
   0x9   :  { %s388_s27 = scalar_lea.vmem %s29_s19, 512  ;;  %p393_p4 = scmp.lt.s32.totalorder %s29_s19, %s29_s19 }
   0xa   :  { %p389_p3 = scmp.ne.s32.totalorder %s29_s19, %s388_s27  ;;  %p394_p5 = scmp.lt.s32.totalorder %s388_s27, %s388_s27 }
   0xc   :  { %p395_p6 = por %p394_p5, %p393_p4 }
   0xe   :  { %p396_p7 = pnand %p395_p6, %p389_p3 }
  0x10   :  { %399 = shalt.err (!%p396_p7)
}
  0x11   :  { %s473_s28 = smov 128   ;;  %s474_s29 = smov 8  }
  0x12   :  { %34 = dma.hbm_to_vmem [thread:$0]  %s572_s1, 512, %s29_s19, [#allocation6], %s473_s28, %s473_s28, %s474_s29  }
  0x13   :  { %s475_s7 = smov [#allocation2]   ;;  %s476_s9 = smov [#allocation7]  }
  0x14   :  { %s19_s8 = sshll.u32 %s475_s7, 4  ;;  %s42_s10 = sshll.u32 %s476_s9, 4  ;;  %s20_s8 = int_to_ptr.vmem [resolvable:$true] %s19_s8  ;;  %s43_s10 = int_to_ptr.vmem [resolvable:$true] %s42_s10 }
  0x15   :  { %s400_s13 = scalar_lea.hbm %s571_s0, 128 }
  0x16   :  { %p401_p8 = scmp.ne.s32.totalorder %s571_s0, %s400_s13  ;;  %p404_p9 = scmp.lt.u32.totalorder %s400_s13, %s571_s0 }
  0x18   :  { %p406_p10 = pnand %p404_p9, %p401_p8 }
  0x1a   :  { %409 = shalt.err (!%p406_p10)
}
  0x1b   :  { %s410_s1 = scalar_lea.vmem %s20_s8, 128  ;;  %p415_p12 = scmp.lt.s32.totalorder %s20_s8, %s20_s8 }
  0x1c   :  { %p411_p11 = scmp.ne.s32.totalorder %s20_s8, %s410_s1  ;;  %p416_p13 = scmp.lt.s32.totalorder %s410_s1, %s410_s1 }
  0x1e   :  { %p417_p0 = por %p416_p13, %p415_p12 }
  0x20   :  { %p418_p1 = pnand %p417_p0, %p411_p11 }
  0x22   :  { %421 = shalt.err (!%p418_p1)
}
  0x23   :  { %22 = dma.hbm_to_vmem [thread:$0]  %s571_s0, 128, %s20_s8, [#allocation3]  }
  0x24   :  { %s422_s22 = scalar_lea.hbm %s574_s3, 2048 }
  0x25   :  { %p423_p2 = scmp.ne.s32.totalorder %s574_s3, %s422_s22  ;;  %p426_p3 = scmp.lt.u32.totalorder %s422_s22, %s574_s3 }
  0x27   :  { %p428_p4 = pnand %p426_p3, %p423_p2 }
  0x29   :  { %431 = shalt.err (!%p428_p4)
}
  0x2a   :  { %s432_s27 = scalar_lea.vmem %s43_s10, 2048  ;;  %p437_p6 = scmp.lt.s32.totalorder %s43_s10, %s43_s10 }
  0x2b   :  { %p433_p5 = scmp.ne.s32.totalorder %s43_s10, %s432_s27  ;;  %p438_p7 = scmp.lt.s32.totalorder %s432_s27, %s432_s27 }
  0x2d   :  { %p439_p8 = por %p438_p7, %p437_p6 }
  0x2f   :  { %p440_p9 = pnand %p439_p8, %p433_p5 }
  0x31   :  { %443 = shalt.err (!%p440_p9)
}
  0x32   :  { %48 = dma.hbm_to_vmem [thread:$0]  %s574_s3, 2048, %s43_s10, [#allocation6], %s473_s28, %s473_s28, %s474_s29  }
  0x33   :  { %466 = dma.done.wait [#allocation3], 128  }
  0x34   :  { %467 = vsyncadd [#allocation3], 4294967168 }
  0x35   :  { %468 = dma.done.wait [#allocation6], 2560  }
  0x36   :  { %469 = vsyncadd [#allocation6], 4294964736  ;;  %v477_v0 = vmov 0.0|0.0   ;;  %vm478_vm0 = vmmov 0   ;;  %v479_v1 = vmov 0.0   ;;  %v61_v2 = vld [vmem:[#allocation5] sm:$0xff] }
  0x37   :  { %335 = vmatprep.subr.bf16.mxu0 %v477_v0  ;;  %297 = vmatprep.mubr.msk.f32.mxu0 %vm478_vm0, %v479_v1  ;;  %v62_v3 = vld [vmem:[#allocation5 + $0x8] sm:$0xff]  ;;  %v63_v4 = vld [vmem:[#allocation5 + $0x10] sm:$0xff]  ;;  %v64_v6 = vld [vmem:[#allocation5 + $0x18] sm:$0xff]  ;;  %vm72_vm1 = vcmask 261120   ;;  %s480_s7 = smov [#allocation8]  }
  0x38   :  { %341 = vmatprep.subr.bf16.mxu1 %v477_v0  ;;  %332 = vmatprep.mubr.msk.f32.mxu1 %vm478_vm0, %v479_v1  ;;  %v336_v5 = vpack.c.bf16 %v62_v3, %v61_v2  ;;  %v147_v7 = vld [vmem:[#allocation7] sm:$0xff]  ;;  %v148_v8 = vld [vmem:[#allocation7 + $0x8] sm:$0xff]  ;;  %v149_v9 = vld [vmem:[#allocation7 + $0x10] sm:$0xff]  ;;  %v339_v11 = vpack.c.bf16 %v64_v6, %v63_v4  ;;  %s253_s8 = sshll.u32 %s480_s7, 4  ;;  %s254_s8 = int_to_ptr.vmem [resolvable:$true] %s253_s8 }
  0x39   :  { %v150_v10 = vld [vmem:[#allocation7 + $0x18] sm:$0xff]  ;;  %v342_v12 = vpack.c.bf16 %v148_v8, %v147_v7  ;;  %v151_v14 = vld [vmem:[#allocation7 + $0x20] sm:$0xff]  ;;  %v152_v15 = vld [vmem:[#allocation7 + $0x28] sm:$0xff]  ;;  %p449_p11 = scmp.lt.s32.totalorder %s254_s8, %s254_s8 }
  0x3a   :  { %337 = vmatpush3.bf16.msra.mxu0 %v336_v5  ;;  %v345_v13 = vpack.c.bf16 %v150_v10, %v149_v9  ;;  %v60_v16 = vld [vmem:[#allocation2] sm:$0xff]  ;;  %v348_v17 = vpack.c.bf16 %v152_v15, %v151_v14  ;;  %v153_v18 = vld [vmem:[#allocation7 + $0x30] sm:$0xff]  ;;  %v155_v21 = vld [vmem:[#allocation7 + $0x40] sm:$0xff] }
  0x3b   :  { %338 = vmatprep.subr.bf16.mxu0 %v477_v0  ;;  %343 = vmatpush3.bf16.msra.mxu1 %v342_v12  ;;  %v154_v19 = vld [vmem:[#allocation7 + $0x38] sm:$0xff]  ;;  %v156_v22 = vld [vmem:[#allocation7 + $0x48] sm:$0xff]  ;;  %v157_v24 = vld [vmem:[#allocation7 + $0x50] sm:$0xff] }
  0x3c   :  { %344 = vmatprep.subr.bf16.mxu1 %v477_v0  ;;  %v351_v20 = vpack.c.bf16 %v154_v19, %v153_v18  ;;  %v354_v23 = vpack.c.bf16 %v156_v22, %v155_v21  ;;  %v158_v25 = vld [vmem:[#allocation7 + $0x58] sm:$0xff]  ;;  %v159_v27 = vld [vmem:[#allocation7 + $0x60] sm:$0xff]  ;;  %v160_v28 = vld [vmem:[#allocation7 + $0x68] sm:$0xff] }
  0x3d   :  { %v357_v26 = vpack.c.bf16 %v158_v25, %v157_v24  ;;  %v360_v29 = vpack.c.bf16 %v160_v28, %v159_v27  ;;  %v161_v30 = vld [vmem:[#allocation7 + $0x70] sm:$0xff]  ;;  %v162_v31 = vld [vmem:[#allocation7 + $0x78] sm:$0xff] }
  0x3e   :  { %340 = vmatpush3.bf16.msra.mxu0 %v339_v11  ;;  %v363_v32 = vpack.c.bf16 %v162_v31, %v161_v30  ;;  %v263_v33 = vld [vmem:[%s573_s2] ss:$0 sm:$0xff]  ;;  %s444_s2 = scalar_lea.vmem %s254_s8, 128 }
  0x3f   :  { %346 = vmatpush3.bf16.msra.mxu1 %v345_v13  ;;  %v265_v38 = vld [vmem:[%s575_s4] ss:$0 sm:$0xff]  ;;  %p445_p10 = scmp.ne.s32.totalorder %s254_s8, %s444_s2  ;;  %p450_p12 = scmp.lt.s32.totalorder %s444_s2, %s444_s2 }
  0x40   :  { %347 = vmatprep.subr.bf16.mxu1 %v477_v0 }
  0x41   :  { %298 = vmatmul.mubr.msk.f32.vlgmr.msra.gmra.mrb[0].mxu0 %vm72_vm1, %v60_v16  ;;  %p451_p13 = por %p450_p12, %p449_p11 }
  0x43   :  { %349 = vmatpush3.bf16.msra.mxu1 %v348_v17  ;;  %p452_p0 = pnand %p451_p13, %p445_p10 }
  0x44   :  { %350 = vmatprep.subr.bf16.mxu1 %v477_v0 }
  0x47   :  { %352 = vmatpush3.bf16.msra.mxu1 %v351_v20 }
  0x48   :  { %353 = vmatprep.subr.bf16.mxu1 %v477_v0 }
  0x4b   :  { %355 = vmatpush3.bf16.msra.mxu1 %v354_v23 }
  0x4c   :  { %356 = vmatprep.subr.bf16.mxu1 %v477_v0 }
  0x4f   :  { %358 = vmatpush3.bf16.msra.mxu1 %v357_v26 }
  0x50   :  { %359 = vmatprep.subr.bf16.mxu1 %v477_v0 }
  0x53   :  { %361 = vmatpush3.bf16.msra.mxu1 %v360_v29 }
  0x54   :  { %362 = vmatprep.subr.bf16.mxu1 %v477_v0 }
  0x57   :  { %364 = vmatpush3.bf16.msra.mxu1 %v363_v32 }
 0x114   :  { %v142_v34 = vpop.f32.mrb[0].mxu0 }
 0x115   :  { %v143_v35 = vadd.f32 %v263_v33, %v142_v34  ;;  %v299_v36 = vpop.f32.mrb[1].mxu0 }
 0x117   :  { %v146_v37 = vmax.f32 %v143_v35, 0.0 }
 0x119   :  { %333 = vmatmul.mubr.f32.vlgmr.msra.gmra.mrb[0].mxu1 %v146_v37 }
 0x1ec   :  { %v236_v39 = vpop.f32.mrb[0].mxu1 }
 0x1ed   :  { %v237_v40 = vadd.f32 %v265_v38, %v236_v39  ;;  %v334_v41 = vpop.f32.mrb[1].mxu1 }
 0x1ef   :  { %v266_v42 = vmul.f32 -1.442695, %v237_v40 }
 0x1f1   :  { %374 = vpow2.f32 %v266_v42 }
 0x1fb   :  { %v375_v43 = vpop.eup %374 }
 0x1fc   :  { %v243_v44 = vadd.f32 1.0, %v375_v43 }
 0x1fe   :  { %376 = vrcp.f32 %v243_v44 }
 0x208   :  { %v377_v45 = vpop.eup %376 }
 0x209   :  { %246 = vst [vmem:[#allocation8] sm:$0xff] %v377_v45 }
 0x20a   :  { %455 = shalt.err (!%p452_p0)
}
 0x20b   :  { %s456_s10 = scalar_lea.hbm %s576_s5, 128 }
 0x20c   :  { %p457_p1 = scmp.ne.s32.totalorder %s576_s5, %s456_s10  ;;  %p460_p2 = scmp.lt.u32.totalorder %s456_s10, %s576_s5 }
 0x20e   :  { %p462_p3 = pnand %p460_p2, %p457_p1 }
 0x210   :  { %465 = shalt.err (!%p462_p3)
}
 0x211   :  { %256 = dma.vmem_to_hbm [thread:$0]  %s254_s8, 128, %s576_s5, [#allocation4]  }
 0x212   :  { %470 = dma.done.wait [#allocation4], 128  }
 0x213   :  { %471 = vsyncadd [#allocation4], 4294967168 }
 0x214   :  { %260 = vsyncpa [#allocation3], 1 }
 0x215   :  { %261 = vsyncpa [#allocation6], 1 }
 0x216   :  { %262 = vsyncpa [#allocation4], 1 }

</bundles_post_ra>
